<compile_context>
chip_gen: v6e
topology: v6e:2x2x1
jax: 0.10.0
libtpu: 0.0.40
codegen_flags: <defaults>
</compile_context>

<pallas_src>
import functools

import jax
import jax.numpy as jnp
import numpy as np
from jax.experimental import pallas as pl
from jax.experimental.pallas import tpu as pltpu

# MXU / activation / parameter storage dtypes.  bf16 halves HBM/DMA traffic
# and unlocks full MXU rate on v6e/v7x; accumulation stays f32 via
# preferred_element_type and all softmax/tanh/CE epilogue math stays f32
# (required on v5e's VPU/EUP anyway).  Set all three to jnp.float32 for a
# tight numerical check.
MXU_DTYPE = jnp.bfloat16
ACT_DTYPE = jnp.bfloat16     # activations handed between kernels (HBM)
PARAM_DTYPE = jnp.bfloat16   # weights / embedding in HBM (biases stay f32)

_VMEM_LIMIT = 48 * 1024 * 1024   # explicit scoped-VMEM cap (v7x total is 64 MiB)

_DN_NT = (((1,), (1,)), ((), ()))   # contract last dims of both operands (A @ B^T)
_DN_NN = (((1,), (0,)), ((), ()))   # ordinary row-major matmul (A @ B)


def _mm_nt(a, b):
    """a @ b.T without materializing the transpose ([out,in] weights feed MXU)."""
    return jax.lax.dot_general(a.astype(MXU_DTYPE), b.astype(MXU_DTYPE),
                               dimension_numbers=_DN_NT,
                               preferred_element_type=jnp.float32)


def _mm_nn(a, b):
    return jax.lax.dot_general(a.astype(MXU_DTYPE), b.astype(MXU_DTYPE),
                               dimension_numbers=_DN_NN,
                               preferred_element_type=jnp.float32)


# ----------------------------- Pallas kernels ------------------------------

def _linear_kernel(x_ref, w_ref, b_ref, o_ref, *, act):
    # y = act(x @ W^T + b)   (PyTorch nn.Linear convention, no transpose op)
    y = _mm_nt(x_ref[...], w_ref[...]) + b_ref[...]
    if act == "tanh":
        y = jnp.tanh(y)
    elif act == "relu":
        y = jnp.maximum(y, 0.0)
    o_ref[...] = y.astype(o_ref.dtype)


def pallas_linear(x, w, b, act="none", tm=None):
    n, din = x.shape
    dout = w.shape[0]
    if tm is None:
        tm = n if n <= 256 else 256
    # TODO(synk): ragged row tiles would need masked epilogues.
    assert n % tm == 0, "row tile must divide N"
    return pl.pallas_call(
        functools.partial(_linear_kernel, act=act),
        grid=(n // tm,),
        out_shape=jax.ShapeDtypeStruct((n, dout), ACT_DTYPE),
        in_specs=[
            pl.BlockSpec((tm, din), lambda i: (i, 0)),
            pl.BlockSpec((dout, din), lambda i: (0, 0)),   # weight loaded once
            pl.BlockSpec((1, dout), lambda i: (0, 0)),
        ],
        out_specs=pl.BlockSpec((tm, dout), lambda i: (i, 0)),
        compiler_params=pltpu.CompilerParams(
            dimension_semantics=("parallel",), vmem_limit_bytes=_VMEM_LIMIT),
    )(x, w, b.reshape(1, dout))


def _kv_linear_kernel(x_ref, w_ref, b_ref, k_ref, v_ref, *, h):
    # One fused 2H-wide matmul (good MXU width on v6e/v7x), then two
    # lane-dense slice writes -> no XLA slice copies of a [N, 2H] tensor.
    y = _mm_nt(x_ref[...], w_ref[...]) + b_ref[...]
    k_ref[...] = y[:, :h].astype(k_ref.dtype)
    v_ref[...] = y[:, h:].astype(v_ref.dtype)


def pallas_kv_linear(x, w_kv, b_kv, h, tm=None):
    n, din = x.shape
    dout = w_kv.shape[0]           # 2 * h
    if tm is None:
        tm = n if n <= 256 else 256
    assert n % tm == 0, "row tile must divide N"
    return pl.pallas_call(
        functools.partial(_kv_linear_kernel, h=h),
        grid=(n // tm,),
        out_shape=(jax.ShapeDtypeStruct((n, h), ACT_DTYPE),
                   jax.ShapeDtypeStruct((n, h), ACT_DTYPE)),
        in_specs=[
            pl.BlockSpec((tm, din), lambda i: (i, 0)),
            pl.BlockSpec((dout, din), lambda i: (0, 0)),
            pl.BlockSpec((1, dout), lambda i: (0, 0)),
        ],
        out_specs=(pl.BlockSpec((tm, h), lambda i: (i, 0)),
                   pl.BlockSpec((tm, h), lambda i: (i, 0))),
        compiler_params=pltpu.CompilerParams(
            dimension_semantics=("parallel",), vmem_limit_bytes=_VMEM_LIMIT),
    )(x, w_kv, b_kv.reshape(1, dout))


def _ffn_kernel(x_ref, w1_ref, b1_ref, w2_ref, b2_ref, o_ref, acc_sc):
    # out = x + relu(x @ W1^T + b1) @ W2^T + b2, tiled over F with accumulation.
    fi = pl.program_id(1)

    @pl.when(fi == 0)
    def _():
        acc_sc[...] = jnp.zeros_like(acc_sc)

    h = jnp.maximum(_mm_nt(x_ref[...], w1_ref[...]) + b1_ref[...], 0.0)
    acc_sc[...] += _mm_nt(h, w2_ref[...])

    @pl.when(fi == pl.num_programs(1) - 1)
    def _():
        o_ref[...] = (x_ref[...].astype(jnp.float32) + acc_sc[...]
                      + b2_ref[...]).astype(o_ref.dtype)


def pallas_ffn(x, w1, b1, w2, b2, tm=None, tf=None):
    n, h = x.shape
    f = w1.shape[0]
    if tm is None:
        tm = n if n <= 256 else 256
    if tf is None:
        tf = f if f <= 256 else 256        # 256-multiple tiles for the MXU
    assert n % tm == 0 and f % tf == 0, "FFN tiles must divide N and F"
    return pl.pallas_call(
        _ffn_kernel,
        grid=(n // tm, f // tf),
        out_shape=jax.ShapeDtypeStruct((n, h), ACT_DTYPE),
        in_specs=[
            pl.BlockSpec((tm, h), lambda r, fi: (r, 0)),
            pl.BlockSpec((tf, h), lambda r, fi: (fi, 0)),
            pl.BlockSpec((1, tf), lambda r, fi: (0, fi)),
            pl.BlockSpec((h, tf), lambda r, fi: (0, fi)),
            pl.BlockSpec((1, h), lambda r, fi: (0, 0)),
        ],
        out_specs=pl.BlockSpec((tm, h), lambda r, fi: (r, 0)),
        scratch_shapes=[pltpu.VMEM((tm, h), jnp.float32)],
        compiler_params=pltpu.CompilerParams(
            dimension_semantics=("parallel", "arbitrary"),
            vmem_limit_bytes=_VMEM_LIMIT),
    )(x, w1, b1.reshape(1, f), w2, b2.reshape(1, h))


def _attn_kernel(xq_ref, k_ref, v_ref, m_ref, wq_ref, bq_ref, wo_ref, bo_ref,
                 o_ref, q_sc, m_sc, l_sc, acc_sc, *, scale):
    # Flash-tiled single-head attention with the Q projection folded into the
    # prologue and output projection + residual folded into the epilogue.
    kv = pl.program_id(2)

    @pl.when(kv == 0)
    def _():
        q = _mm_nt(xq_ref[0], wq_ref[...]) + bq_ref[...]
        q_sc[...] = q.astype(q_sc.dtype)
        m_sc[...] = jnp.full_like(m_sc, -jnp.inf)
        l_sc[...] = jnp.zeros_like(l_sc)
        acc_sc[...] = jnp.zeros_like(acc_sc)

    # mask block is (tq, tk) [shared causal, tiled] or (1, tk) [per-batch key
    # padding]; broadcast happens in-register, never materialized as [B,T,*].
    s = _mm_nt(q_sc[...], k_ref[0]) * scale + m_ref[0]
    m_new = jnp.maximum(m_sc[...], jnp.max(s, axis=-1, keepdims=True))
    alpha = jnp.exp(m_sc[...] - m_new)
    p = jnp.exp(s - m_new)
    l_sc[...] = alpha * l_sc[...] + jnp.sum(p, axis=-1, keepdims=True)
    acc_sc[...] = alpha * acc_sc[...] + _mm_nn(p, v_ref[0])
    m_sc[...] = m_new

    @pl.when(kv == pl.num_programs(2) - 1)
    def _():
        # approx reciprocal goes to the EUP slot; error ~1e-3 on probabilities.
        ctx = acc_sc[...] * pl.reciprocal(l_sc[...], approx=True)
        o = (xq_ref[0].astype(jnp.float32)
             + _mm_nt(ctx, wo_ref[...]) + bo_ref[...])
        o_ref[0] = o.astype(o_ref.dtype)


def pallas_attention(xq, k, v, add_mask, wq, bq, wo, bo, scale,
                     tq=None, tk=None):
    B, T, H = xq.shape
    Tk = k.shape[1]
    if tq is None:
        tq = T if T <= 128 else 128
    if tk is None:
        tk = Tk if Tk <= 128 else 128
    assert T % tq == 0 and Tk % tk == 0, "attention tiles must divide T / Tk"
    mB, mT, _ = add_mask.shape
    mq = tq if mT != 1 else 1

    def mask_map(b, qi, ki):
        return (b if mB != 1 else 0, qi if mT != 1 else 0, ki)

    cost = pl.CostEstimate(
        flops=int(4 * B * T * H * (H + Tk)),
        transcendentals=int(B * T * Tk),
        bytes_accessed=int(2 * B * H * (2 * T + 2 * Tk) + 4 * add_mask.size
                           + 4 * H * H))
    return pl.pallas_call(
        functools.partial(_attn_kernel, scale=scale),
        grid=(B, T // tq, Tk // tk),
        out_shape=jax.ShapeDtypeStruct((B, T, H), ACT_DTYPE),
        in_specs=[
            pl.BlockSpec((1, tq, H), lambda b, qi, ki: (b, qi, 0)),
            pl.BlockSpec((1, tk, H), lambda b, qi, ki: (b, ki, 0)),
            pl.BlockSpec((1, tk, H), lambda b, qi, ki: (b, ki, 0)),
            pl.BlockSpec((1, mq, tk), mask_map),
            pl.BlockSpec((H, H), lambda b, qi, ki: (0, 0)),
            pl.BlockSpec((1, H), lambda b, qi, ki: (0, 0)),
            pl.BlockSpec((H, H), lambda b, qi, ki: (0, 0)),
            pl.BlockSpec((1, H), lambda b, qi, ki: (0, 0)),
        ],
        out_specs=pl.BlockSpec((1, tq, H), lambda b, qi, ki: (b, qi, 0)),
        scratch_shapes=[
            pltpu.VMEM((tq, H), MXU_DTYPE),        # projected q
            pltpu.VMEM((tq, 1), jnp.float32),      # running max
            pltpu.VMEM((tq, 1), jnp.float32),      # running sum-exp
            pltpu.VMEM((tq, H), jnp.float32),      # unnormalized context
        ],
        compiler_params=pltpu.CompilerParams(
            dimension_semantics=("parallel", "parallel", "arbitrary"),
            vmem_limit_bytes=_VMEM_LIMIT),
        cost_estimate=cost,
    )(xq, k, v, add_mask, wq, bq.reshape(1, H), wo, bo.reshape(1, H))


def _head_kernel(x_ref, wd_ref, bd_ref, emb_ref, labemb_ref, cem_ref, act_ref,
                 out_ref, h_sc, m_sc, l_sc):
    kv = pl.program_id(1)

    @pl.when(kv == 0)
    def _():
        # hidden = tanh(dense(x)): computed once per row tile, reused for
        # every vocab tile of the tied lm_head.
        h = jnp.tanh(_mm_nt(x_ref[...], wd_ref[...]) + bd_ref[...])
        h_sc[...] = h.astype(h_sc.dtype)
        m_sc[...] = jnp.full_like(m_sc, -jnp.inf)
        l_sc[...] = jnp.zeros_like(l_sc)

    # logits tile = hidden @ emb_tile^T (tied lm_head, no bias) -> [tm, tv]
    logits = _mm_nt(h_sc[...], emb_ref[...])
    m_new = jnp.maximum(m_sc[...], jnp.max(logits, axis=-1, keepdims=True))
    l_sc[...] = (l_sc[...] * jnp.exp(m_sc[...] - m_new)
                 + jnp.sum(jnp.exp(logits - m_new), axis=-1, keepdims=True))
    m_sc[...] = m_new

    @pl.when(kv == pl.num_programs(1) - 1)
    def _():
        # label logit from the wrapper-gathered emb[label] row (hoisted out of
        # the vocab loop); ce = logsumexp(logits) - label_logit.
        labl = jnp.sum(h_sc[...].astype(jnp.float32)
                       * labemb_ref[...].astype(jnp.float32),
                       axis=-1, keepdims=True)
        ce = (m_sc[...] + jnp.log(l_sc[...])) - labl
        cem = cem_ref[...]                 # active & label != -1 & shifted
        num = jnp.sum(ce * cem)            # CE numerator partial
        den = jnp.sum(cem)                 # CE denominator partial
        act = jnp.sum(act_ref[...])        # active_loss.sum() partial
        lane = jax.lax.broadcasted_iota(jnp.int32, (1, 8, 128), 2)
        out_ref[...] = (jnp.where(lane == 0, num, 0.0)
                        + jnp.where(lane == 1, den, 0.0)
                        + jnp.where(lane == 2, act, 0.0))


def pallas_head(x, w_dense, b_dense, w_emb, lab_emb, ce_mask, act_mask,
                tm=None, tv=None):
    n, hdim = x.shape
    v = w_emb.shape[0]
    if tm is None:
        # Larger row tiles -> fewer full-vocab embedding re-streams.
        tm = n if n <= 512 else 512
    if tv is None:
        # bf16 emb tile (tv, H) double-buffered stays far below the explicit
        # VMEM limit even at H=1024 on v7x.
        tv = v if v <= 2048 else 2048
    # TODO(synk): ragged (non-dividing) tiles would need in-kernel masking.
    assert n % tm == 0 and v % tv == 0, "head tiles must divide N and V"
    nr = n // tm
    cost = pl.CostEstimate(
        flops=int(2 * n * hdim * (hdim + v)),
        transcendentals=int(n * (v + 1)),
        bytes_accessed=int(nr * v * hdim * 2 + 6 * n * hdim))
    out = pl.pallas_call(
        _head_kernel,
        grid=(nr, v // tv),            # rows outer (parallel), vocab inner
        out_shape=jax.ShapeDtypeStruct((nr, 8, 128), jnp.float32),
        in_specs=[
            pl.BlockSpec((tm, hdim), lambda r, kv: (r, 0)),
            pl.BlockSpec((hdim, hdim), lambda r, kv: (0, 0)),
            pl.BlockSpec((1, hdim), lambda r, kv: (0, 0)),
            pl.BlockSpec((tv, hdim), lambda r, kv: (kv, 0)),   # emb vocab tile
            pl.BlockSpec((tm, hdim), lambda r, kv: (r, 0)),    # emb[labels]
            pl.BlockSpec((tm, 1), lambda r, kv: (r, 0)),
            pl.BlockSpec((tm, 1), lambda r, kv: (r, 0)),
        ],
        out_specs=pl.BlockSpec((1, 8, 128), lambda r, kv: (r, 0, 0)),
        scratch_shapes=[
            pltpu.VMEM((tm, hdim), MXU_DTYPE),     # hidden = tanh(dense(x))
            pltpu.VMEM((tm, 1), jnp.float32),      # running max
            pltpu.VMEM((tm, 1), jnp.float32),      # running sum-exp
        ],
        compiler_params=pltpu.CompilerParams(
            # Row axis is 'parallel' (megacore-shardable) because each row
            # tile writes its own partial-sum block; vocab axis is the
            # reduction and stays 'arbitrary'.
            dimension_semantics=("parallel", "arbitrary"),
            vmem_limit_bytes=_VMEM_LIMIT),
        cost_estimate=cost,
    )(x, w_dense, b_dense.reshape(1, hdim), w_emb, lab_emb, ce_mask, act_mask)
    num = jnp.sum(out[:, 0, 0])
    den = jnp.sum(out[:, 0, 1])
    act = jnp.sum(out[:, 0, 2])
    # NOTE: like nn.CrossEntropyLoss, NaN if no active token with label != -1
    # (no denominator guard, to match PyTorch semantics).
    loss = num / den
    return loss, loss * act, act


# ------------------------- plain-JAX references ----------------------------

def jnp_linear(x, w, b, act="none"):
    y = _mm_nt(x, w) + b
    if act == "tanh":
        y = jnp.tanh(y)
    elif act == "relu":
        y = jnp.maximum(y, 0.0)
    return y.astype(ACT_DTYPE)


def jnp_kv_linear(x, w, b, h):
    y = _mm_nt(x, w) + b
    return y[:, :h].astype(ACT_DTYPE), y[:, h:].astype(ACT_DTYPE)


def jnp_attention(xq, k, v, add_mask, wq, bq, wo, bo, scale):
    B, T, H = xq.shape
    q = (_mm_nt(xq.reshape(B * T, H), wq) + bq).astype(MXU_DTYPE)
    q = q.reshape(B, T, H)
    s = jnp.einsum("bqh,bkh->bqk", q, k.astype(MXU_DTYPE),
                   preferred_element_type=jnp.float32) * scale + add_mask
    p = jax.nn.softmax(s, axis=-1)
    ctx = jnp.einsum("bqk,bkh->bqh", p.astype(MXU_DTYPE), v.astype(MXU_DTYPE),
                     preferred_element_type=jnp.float32)
    o = (xq.astype(jnp.float32)
         + _mm_nt(ctx.reshape(B * T, H), wo).reshape(B, T, H) + bo)
    return o.astype(ACT_DTYPE)


def jnp_ffn(x, w1, b1, w2, b2):
    h = jnp.maximum(_mm_nt(x, w1) + b1, 0.0)
    y = x.astype(jnp.float32) + _mm_nt(h, w2) + b2
    return y.astype(ACT_DTYPE)


def jnp_head(x, wd, bd, we, labels, ce_mask, act_mask):
    h = jnp.tanh(_mm_nt(x, wd) + bd)
    logits = _mm_nt(h, we)
    lse = jax.scipy.special.logsumexp(logits, axis=-1, keepdims=True)
    lab = jnp.take_along_axis(logits, jnp.maximum(labels, 0), axis=-1)
    ce = lse - lab
    loss = jnp.sum(ce * ce_mask) / jnp.sum(ce_mask)
    act = jnp.sum(act_mask)
    return loss, loss * act, act


# ------------------------------ parameters ---------------------------------

def init_params(key, V, H, F):
    ks = jax.random.split(key, 16)

    def w(k, shape, scale=0.08):
        return (scale * jax.random.normal(k, shape)).astype(PARAM_DTYPE)

    def bias(k, shape):
        return (0.01 * jax.random.normal(k, shape)).astype(jnp.float32)

    p = {}
    p["emb"] = w(ks[0], (V, H), 0.05)     # word embeddings (tied with lm_head)
    p["enc_w"], p["enc_b"] = w(ks[1], (H, H)), bias(ks[15], (H,))
    for i, nm in enumerate(
            ["sa_q", "sa_k", "sa_v", "sa_o", "ca_q", "ca_k", "ca_v", "ca_o"]):
        p[nm + "_w"] = w(ks[2 + i], (H, H))
        p[nm + "_b"] = bias(jax.random.fold_in(ks[2 + i], 1), (H,))
    p["ff1_w"] = w(ks[10], (F, H))
    p["ff1_b"] = bias(jax.random.fold_in(ks[10], 1), (F,))
    p["ff2_w"] = w(ks[11], (H, F))
    p["ff2_b"] = bias(jax.random.fold_in(ks[11], 1), (H,))
    p["dense_w"] = w(ks[12], (H, H))
    p["dense_b"] = bias(jax.random.fold_in(ks[12], 1), (H,))
    return p


# -------------------------------- forward ----------------------------------

def seq2seq_forward(params, source_ids, source_mask, target_ids, target_mask,
                    use_pallas=True, head_tm=None, head_tv=None):
    linear_fn = pallas_linear if use_pallas else jnp_linear
    kv_fn = pallas_kv_linear if use_pallas else jnp_kv_linear
    attn_fn = pallas_attention if use_pallas else jnp_attention
    ffn_fn = pallas_ffn if use_pallas else jnp_ffn

    B, S = source_ids.shape
    T = target_ids.shape[1]
    V, H = params["emb"].shape
    scale = 1.0 / float(np.sqrt(H))

    # ---- encoder ----
    # TODO(synk): the real encoder is an external pretrained RoBERTa module;
    # stand-in is an embedding lookup + Pallas dense+tanh projection.
    src_emb = jnp.take(params["emb"], source_ids, axis=0)              # [B,S,H]
    enc = linear_fn(src_emb.reshape(B * S, H), params["enc_w"],
                    params["enc_b"], act="tanh").reshape(B, S, H)

    # ---- target embeddings ----
    tgt_emb = jnp.take(params["emb"], target_ids, axis=0)              # [B,T,H]

    # ---- masks (never broadcast to [B,T,*] in HBM) ----
    causal = (-10000.0 * (1.0 - jnp.tril(jnp.ones((T, T), jnp.float32))))[None]
    mem_mask = jnp.where(source_mask[:, None, :] == 0,
                         jnp.float32(-1e9), jnp.float32(0.0))          # [B,1,S]

    # ---- decoder ----
    # TODO(synk): real decoder is an external nn.TransformerDecoder; stand-in
    # is a single-head single-layer decoder block (layernorms omitted).
    w_kv = jnp.concatenate([params["sa_k_w"], params["sa_v_w"]], axis=0)
    b_kv = jnp.concatenate([params["sa_k_b"], params["sa_v_b"]], axis=0)
    k, v = kv_fn(tgt_emb.reshape(B * T, H), w_kv, b_kv, H)
    x = attn_fn(tgt_emb, k.reshape(B, T, H), v.reshape(B, T, H), causal,
                params["sa_q_w"], params["sa_q_b"],
                params["sa_o_w"], params["sa_o_b"], scale)

    w_kv = jnp.concatenate([params["ca_k_w"], params["ca_v_w"]], axis=0)
    b_kv = jnp.concatenate([params["ca_k_b"], params["ca_v_b"]], axis=0)
    k, v = kv_fn(enc.reshape(B * S, H), w_kv, b_kv, H)
    x = attn_fn(x, k.reshape(B, S, H), v.reshape(B, S, H), mem_mask,
                params["ca_q_w"], params["ca_q_b"],
                params["ca_o_w"], params["ca_o_b"], scale)

    dec_out = ffn_fn(x.reshape(B * T, H), params["ff1_w"], params["ff1_b"],
                     params["ff2_w"], params["ff2_b"]).reshape(B, T, H)

    # ---- head: dense+tanh, tied lm_head, shifted masked cross-entropy ----
    x2 = dec_out.reshape(B * T, H)
    labels_full = jnp.concatenate(
        [target_ids[:, 1:], jnp.zeros((B, 1), target_ids.dtype)], axis=1)
    active = (target_mask[:, 1:] != 0)                 # active_loss
    active_full = jnp.concatenate([active, jnp.zeros((B, 1), bool)], axis=1)
    ce_valid = active_full & (labels_full != -1)       # ignore_index=-1
    labels = labels_full.reshape(B * T, 1).astype(jnp.int32)
    ce_mask = ce_valid.reshape(B * T, 1).astype(jnp.float32)
    act_mask = active_full.reshape(B * T, 1).astype(jnp.float32)

    if use_pallas:
        # label-logit extraction hoisted out of the vocab loop: gather the
        # label's embedding row once ([N,H], tiny vs the [N,V] logits).
        lab_emb = jnp.take(params["emb"], jnp.maximum(labels[:, 0], 0), axis=0)
        loss, lxs, cnt = pallas_head(x2, params["dense_w"], params["dense_b"],
                                     params["emb"], lab_emb, ce_mask, act_mask,
                                     tm=head_tm, tv=head_tv)
    else:
        loss, lxs, cnt = jnp_head(x2, params["dense_w"], params["dense_b"],
                                  params["emb"], labels, ce_mask, act_mask)
    # outputs = (loss, loss * active_loss.sum(), active_loss.sum())
    return loss, lxs, cnt


# --------------------------------- main -------------------------------------

if __name__ == "__main__":
    # Sizes chosen to exercise every tiled path: 2 q-tiles x 2 kv-tiles in
    # attention, 2 F-tiles in the FFN, 2 row-tiles x 2 vocab-tiles in the head.
    B, S, T, H, V = 2, 256, 256, 128, 512
    F = 4 * H

    key = jax.random.PRNGKey(0)
    kp, k1, k2 = jax.random.split(key, 3)
    params = init_params(kp, V, H, F)

    source_ids = jax.random.randint(k1, (B, S), 0, V, dtype=jnp.int32)
    target_ids = jax.random.randint(k2, (B, T), 0, V, dtype=jnp.int32)
    source_mask = jnp.ones((B, S), jnp.int32).at[1, -5:].set(0)
    target_mask = jnp.ones((B, T), jnp.int32).at[1, -7:].set(0)

    out = seq2seq_forward(params, source_ids, source_mask, target_ids,
                          target_mask, use_pallas=True,
                          head_tm=256, head_tv=256)
    out = jax.block_until_ready(out)

    ref = seq2seq_forward(params, source_ids, source_mask, target_ids,
                          target_mask, use_pallas=False)
    ref = jax.block_until_ready(ref)

    for a, b in zip(out, ref):
        np.testing.assert_allclose(np.asarray(a, dtype=np.float32),
                                   np.asarray(b, dtype=np.float32),
                                   rtol=2e-2, atol=2e-2)
    print("KERNEL_OK")
</pallas_src>

<mosaic_0001>
module attributes {stable_mosaic.version = 11 : i64} {
  func.func @_linear_kernel(%arg0: i32, %arg1: memref<256x128xbf16, #tpu.memory_space<vmem>>, %arg2: memref<128x128xbf16, #tpu.memory_space<vmem>>, %arg3: memref<1x128xf32, #tpu.memory_space<vmem>>, %arg4: memref<256x128xbf16, #tpu.memory_space<vmem>>) attributes {dimension_semantics = [#tpu.dimension_semantics<parallel>], iteration_bounds = array<i64: 2>, scalar_prefetch = 0 : i64, scratch_operands = 0 : i64, tpu.core_type = #tpu.core_type<tc>, window_params = [{transform_indices = @transform_0, window_bounds = array<i64: 256, 128>}, {pipeline_mode = #tpu.pipeline_mode<synchronous>, transform_indices = @transform_1, window_bounds = array<i64: 128, 128>}, {pipeline_mode = #tpu.pipeline_mode<synchronous>, transform_indices = @transform_2, window_bounds = array<i64: 1, 128>}, {transform_indices = @transform_3, window_bounds = array<i64: 256, 128>}]} {
    %c0 = arith.constant 0 : index
    %c0_0 = arith.constant 0 : index
    %0 = vector.load %arg1[%c0, %c0_0] : memref<256x128xbf16, #tpu.memory_space<vmem>>, vector<256x128xbf16>
    %c0_1 = arith.constant 0 : index
    %c0_2 = arith.constant 0 : index
    %1 = vector.load %arg2[%c0_1, %c0_2] : memref<128x128xbf16, #tpu.memory_space<vmem>>, vector<128x128xbf16>
    %cst = arith.constant dense<0.000000e+00> : vector<256x128xf32>
    %2 = tpu.matmul %0, %1, %cst {dimension_numbers = #tpu.dot_dimension_numbers<[1], [1], [0], [0], [0, 0, 1, 0], [], []>} : vector<256x128xbf16>, vector<128x128xbf16>, vector<256x128xf32> -> vector<256x128xf32>
    %c0_3 = arith.constant 0 : index
    %c0_4 = arith.constant 0 : index
    %3 = vector.load %arg3[%c0_3, %c0_4] : memref<1x128xf32, #tpu.memory_space<vmem>>, vector<1x128xf32>
    %4 = vector.broadcast %3 : vector<1x128xf32> to vector<256x128xf32>
    %5 = arith.addf %2, %4 : vector<256x128xf32>
    %6 = math.tanh %5 : vector<256x128xf32>
    %7 = arith.truncf %6 : vector<256x128xf32> to vector<256x128xbf16>
    %c0_5 = arith.constant 0 : index
    %c0_6 = arith.constant 0 : index
    %8 = vector.load %arg4[%c0_5, %c0_6] : memref<256x128xbf16, #tpu.memory_space<vmem>>, vector<256x128xbf16>
    tpu.vector_store %arg4[%c0_5, %c0_6], %7 {strides = array<i32>} : memref<256x128xbf16, #tpu.memory_space<vmem>>, vector<256x128xbf16>,
    return
  }
  func.func @transform_0(%arg0: i32) -> (i32, i32) {
    %c0_i32 = arith.constant 0 : i32
    %c0_i32_0 = arith.constant 0 : i32
    return %arg0, %c0_i32 : i32, i32
  }
  func.func @transform_1(%arg0: i32) -> (i32, i32) {
    %c0_i32 = arith.constant 0 : i32
    %c0_i32_0 = arith.constant 0 : i32
    %c0_i32_1 = arith.constant 0 : i32
    return %c0_i32, %c0_i32_0 : i32, i32
  }
  func.func @transform_2(%arg0: i32) -> (i32, i32) {
    %c0_i32 = arith.constant 0 : i32
    %c0_i32_0 = arith.constant 0 : i32
    %c0_i32_1 = arith.constant 0 : i32
    return %c0_i32, %c0_i32_0 : i32, i32
  }
  func.func @transform_3(%arg0: i32) -> (i32, i32) {
    %c0_i32 = arith.constant 0 : i32
    %c0_i32_0 = arith.constant 0 : i32
    return %arg0, %c0_i32 : i32, i32
  }
}

</mosaic_0001>

<bundles_post_ra>
// kernel: tpu_custom_call.1
= control target key start
LH: loop header
LB: loop body
LE: loop exit
PB: predicated region body
PF: predicated region fallthrough
CT: control target
= control target key end

     0   :  { %8 = vsyncpa [#allocation3], 0  ;;  %s1707_s0 = inlined_call_operand.hbm [shape: bf16[512,128], index: 0, kind: input, shape index: {}]   ;;  %s1708_s1 = inlined_call_operand.hbm [shape: bf16[128,128], index: 1, kind: input, shape index: {}]   ;;  %s1709_s2 = inlined_call_operand.vmem [shape: f32[1,128], index: 2, kind: input, shape index: {}]   ;;  %s1710_s3 = inlined_call_operand.hbm [shape: bf16[512,128], index: 3, kind: output, shape index: {}]  }
   0x1   :  { %10 = vsyncpa [#allocation3 + $0x1], 0 }
   0x2   :  { %11 = vsyncpa [#allocation6], 0 }
   0x3   :  { %12 = vsyncpa [#allocation4], 0 }
   0x4   :  { %14 = vsyncpa [#allocation4 + $0x1], 0  ;;  %s1446_s12 = smov 0   ;;  %s1448_s13 = smov 0  }
   0x5   :  { %s1450_s14 = smov 0   ;;  %s1452_s15 = smov 0  }
   0x6 LB: > { %s1467_s16 = sadd.s32 4294967295, %s1417_s15   ;;  %s856_s17 = sadd.s32 4294967294, %s1417_s15   ;;  %s1417_s15 = sphi %s1452_s15, %s1732_s15   ;;  %s1413_s14 = sphi %s1450_s14, %s1731_s14   ;;  %s1409_s13 = sphi %s1448_s13, %s1730_s13   ;;  %s1405_s12 = sphi %s1446_s12, %s1729_s12  }
   0x7   : > { %p40_p0 = scmp.ne.s32.totalorder %s1409_s13, %s1405_s12  ;;  %p1711_p1 = scmp.eq.s32.totalorder %s1467_s16, 0 }
   0x8   : > { %p112_p3 = scmp.eq.s32.totalorder %s856_s17, 1  ;;  %p857_p5 = scmp.ge.s32.totalorder %s1417_s15, 1 }
   0x9   : > { %p1476_p4 = por %p1711_p1, %p40_p0  ;;  %p119_p7 = scmp.lt.s32.totalorder %s1417_s15, 3 }
   0xa   : > { %p1481_p6 = por %p112_p3, %p40_p0  ;;  %s1419_s21 = smov [#allocation5]  }
   0xb   : > { %s1715_s18 = scalar_select %p1476_p4, 1, 0 }
   0xc   : > { %s1716_s19 = scalar_select %p1481_p6, 1, 0 }
   0xd   : > { %p1486_p8 = pnand %p857_p5, %p119_p7  ;;  %s131_s22 = sshll.u32 %s1419_s21, 4  ;;  %s132_s22 = int_to_ptr.vmem [resolvable:$true] %s131_s22 }
   0xe   : > { %s1500_s24 = sadd.s32 1, %s1417_s15   ;;  %s27_s25 = sadd.s32 1, %s1413_s14 }
   0xf   : > { %s1717_s20 = scalar_select %p1486_p8, 1, 0 }
  0x10   : > { %p1154_p9 = pneg %p1486_p8  ;;  %s24_s26 = ssub.s32 %s1417_s15, %s1500_s24 }
  0x11   : > { %s1306_s27 = scalar_lea.vmem %s132_s22, 1024  ;;  %p1314_p5 = scmp.lt.s32.totalorder %s132_s22, %s132_s22 }
  0x12   : > { %p1495_p11 = pnand %p1154_p9, %p1711_p1  ;;  %p1307_p13 = scmp.ne.s32.totalorder %s132_s22, %s1306_s27 }
  0x13   : > { %p1315_p7 = scmp.lt.s32.totalorder %s1306_s27, %s1306_s27 }
  0x14   : > { %p1297_p12 = pneg %p1495_p11 }
  0x15   : > { %p1316_p10 = por %p1315_p7, %p1314_p5 }
  0x16   : > { %p1309_p0 = pnand %p1307_p13, %p1297_p12 }
  0x18   : > { %p1310_p3 = pneg %p1309_p0 }
  0x1a   : > { %p1317_p2 = pnand %p1316_p10, %p1310_p3 }
  0x1c   : > { %1320 = shalt.err (!%p1317_p2)
}
  0x1d   : > { %s1420_s28 = smov 64   ;;  %s1421_s29 = smov 4  }
  0x1e   : > { %1157 = dma.hbm_to_vmem [thread:$0]  (!%p1495_p11), %s1708_s1, 1024, %s132_s22, [#allocation6], %s1420_s28, %s1420_s28, %s1421_s29  }
  0x1f   : > { %p25_p2 = scmp.eq.s32.totalorder %s24_s26, 0  ;;  %p34_p9 = scmp.ne.s32.totalorder %s1413_s14, %s1409_s13 }
  0x20   : > { %p35_p10 = scmp.eq.s32.totalorder %s1417_s15, 0  ;;  %p1167_p12 = scmp.lt.s32.totalorder %s1417_s15, 2 }
  0x21   : > { %s1520_s5 = scalar_select %p25_p2, %s1413_s14, %s27_s25  }
  0x22   : > { %p36_p13 = por %p35_p10, %p34_p9  ;;  %p1719_p0 = scmp.eq.s32.totalorder %s1467_s16, 1 }
  0x23   : > { %s148_s7 = sand.u32 1, %s1413_s14   ;;  %s929_s8 = sshll.u32 %s1417_s15, 11 }
  0x24   : > { %p1524_p3 = por %p1719_p0, %p34_p9  ;;  %s860_s9 = sshll.u32 %s148_s7, 7 }
  0x25   : > { %s1533_s17 = scalar_lea.hbm %s1707_s0, %s929_s8  ;;  %s152_s21 = scalar_lea.vmem [#allocation2], %s860_s9 }
  0x26   : > { %s1720_s6 = scalar_select %p1524_p3, 1, 0 }
  0x27   : > { %s159_s22 = sshll.u32 %s152_s21, 4  ;;  %p1535_p11 = pnand %p1167_p12, %p36_p13  ;;  %s1539_s22 = int_to_ptr.vmem [resolvable:$true] %s159_s22 }
  0x28   : > { %s1541_s25 = scalar_lea.sflag [#allocation3], %s148_s7  ;;  %s1321_s26 = scalar_lea.hbm %s1533_s17, 2048 }
  0x29   : > { %p1322_p5 = scmp.ne.s32.totalorder %s1533_s17, %s1321_s26  ;;  %p1323_p7 = pneg %p1535_p11 }
  0x2a   : > { %s1326_s4 = scalar_lea.hbm %s1707_s0, 4096  ;;  %p1327_p10 = scmp.lt.s32.totalorder %s1533_s17, %s1707_s0 }
  0x2b   : > { %p1324_p2 = pnand %p1323_p7, %p1322_p5  ;;  %p1328_p12 = scmp.lt.s32.totalorder %s1326_s4, %s1321_s26 }
  0x2d   : > { %p1325_p9 = pneg %p1324_p2  ;;  %p1329_p13 = por %p1328_p12, %p1327_p10 }
  0x2f   : > { %p1330_p0 = pnand %p1329_p13, %p1325_p9 }
  0x31   : > { %1333 = shalt.err (!%p1330_p0)
}
  0x32   : > { %s1334_s7 = scalar_lea.vmem %s1539_s22, 2048  ;;  %s1422_s10 = smov [#allocation2]  }
  0x33   : > { %p1335_p1 = scmp.ne.s32.totalorder %s1539_s22, %s1334_s7  ;;  %s1339_s11 = sshll.u32 %s1422_s10, 4  ;;  %s1340_s11 = int_to_ptr.vmem [resolvable:$false] %s1339_s11 }
  0x34   : > { %s1341_s21 = scalar_lea.vmem %s1340_s11, 4096  ;;  %p1342_p2 = scmp.lt.s32.totalorder %s1539_s22, %s1340_s11 }
  0x35   : > { %p1337_p6 = pnand %p1335_p1, %p1323_p7  ;;  %p1343_p3 = scmp.lt.s32.totalorder %s1341_s21, %s1334_s7 }
  0x37   : > { %p1338_p5 = pneg %p1337_p6  ;;  %p1344_p4 = por %p1343_p3, %p1342_p2 }
  0x39   : > { %p1345_p8 = pnand %p1344_p4, %p1338_p5 }
  0x3b   : > { %1348 = shalt.err (!%p1345_p8)
}
  0x3c   : > { %1161 = dma.hbm_to_vmem [thread:$0]  (!%p1535_p11), %s1533_s17, 2048, %s1539_s22, %s1541_s25, %s1420_s28, %s1420_s28, %s1421_s29  }
  0x3d   : > { %p1722_p1 = scmp.ne.s32.totalorder %s1717_s20, 0 }
  0x3e   : > { %s1568_s26 = sand.u32 (!%p1722_p1), 1, %s1409_s13   ;;  %p1723_p4 = scmp.ne.s32.totalorder (!%p1722_p1), %s1715_s18, 0 }
  0x3f   : > { %171 = sbr.rel (%p1722_p1) target bundleno = 393 (0x189), region = 32  ;;  %s864_s27 = sshll.u32 (!%p1722_p1), %s1568_s26, 7 }
  0x40   : > { %s174_s30 = scalar_lea.sflag (!%p1722_p1), [#allocation3], %s1568_s26  ;;  %s1574_s23 = scalar_lea.vmem (!%p1722_p1), [#allocation2], %s864_s27 }
  0x44   : > { %1392 = dma.done.wait (%p1723_p4), %s174_s30, 2048  }
  0x45   : > { %1394 = vsyncadd (%p1723_p4), %s174_s30, 4294965248  ;;  %p1724_p6 = scmp.eq.s32.totalorder %s1467_s16, 0 }
  0x47   : > { %1396 = dma.done.wait (%p1724_p6), [#allocation6], 1024   ;;  %p1725_p8 = pmov %p1724_p6 }
  0x48   : > { %v1207_v0 = vld [vmem:[#allocation5 + $0x38] sm:$0xff]   ;;  %v1208_v1 = vld [vmem:[#allocation5 + $0x30] sm:$0xff]   ;;  %v1209_v2 = vld [vmem:[#allocation5 + $0x28] sm:$0xff]   ;;  %s1629_s28 = scalar_lea.vmem [#allocation7], %s864_s27  ;;  %s962_s29 = sshll.u32 %s1467_s16, 11 }
  0x49   : > { %1398 = vsyncadd (%p1725_p8), [#allocation6], 4294966272  ;;  %1082 = vmatprep.subr.bf16.mxu0 %v1207_v0  ;;  %1130 = vmatprep.subr.bf16.mxu1 %v1207_v0  ;;  %v1215_v3 = vld [vmem:[%s1574_s23] sm:$0xff]   ;;  %v1211_v6 = vld [vmem:[#allocation5 + $0x18] sm:$0xff]   ;;  %s773_s17 = sshll.u32 %s1629_s28, 4  ;;  %s1659_s4 = scalar_lea.hbm %s1710_s3, %s962_s29  ;;  %s1661_s17 = int_to_ptr.vmem [resolvable:$true] %s773_s17 }
  0x4a   : > { %1083 = vmatpush3.bf16.xpose.msra.mxu0 %v1207_v0  ;;  %1138 = vmatpush3.bf16.xpose.msra.mxu1 %v1207_v0  ;;  %v1216_v4 = vld [vmem:[%s1574_s23 + $0x40] sm:$0xff]   ;;  %v1212_v7 = vld [vmem:[#allocation5 + $0x10] sm:$0xff]   ;;  %v1213_v8 = vld [vmem:[#allocation5 + $0x8] sm:$0xff]   ;;  %s760_s16 = scalar_lea.sflag [#allocation4], %s1568_s26  ;;  %s1349_s8 = scalar_lea.vmem %s1661_s17, 2048 }
  0x4b   : > { %1084 = vmatprep.subr.bf16.mxu0 %v1208_v1  ;;  %1131 = vmatprep.subr.bf16.mxu1 %v1208_v1  ;;  %v1210_v5 = vld [vmem:[#allocation5 + $0x20] sm:$0xff]   ;;  %v1217_v10 = vld [vmem:[%s1574_s23 + $0x8] sm:$0xff]   ;;  %v1219_v12 = vld [vmem:[%s1574_s23 + $0x10] sm:$0xff]   ;;  %p1350_p3 = scmp.ne.s32.totalorder %s1661_s17, %s1349_s8  ;;  %p1726_p11 = scmp.ne.s32.totalorder %s1720_s6, 0 }
  0x4c   : > { %1098 = vmatprep.mubr.bf16.mxu0 %v1215_v3  ;;  %1114 = vmatprep.mubr.bf16.mxu1 %v1216_v4  ;;  %v1214_v9 = vld [vmem:[#allocation5] sm:$0xff]   ;;  %v1218_v11 = vld [vmem:[%s1574_s23 + $0x48] sm:$0xff]   ;;  %v1220_v13 = vld [vmem:[%s1574_s23 + $0x50] sm:$0xff]   ;;  %s1423_s9 = smov [#allocation7]  }
  0x4d   : > { %v1221_v14 = vld [vmem:[%s1574_s23 + $0x18] sm:$0xff]   ;;  %v1223_v16 = vld [vmem:[%s1574_s23 + $0x20] sm:$0xff]   ;;  %v1225_v18 = vld [vmem:[%s1574_s23 + $0x28] sm:$0xff]   ;;  %p1351_p7 = pnand %p1350_p3, %p1726_p11  ;;  %s1353_s7 = sshll.u32 %s1423_s9, 4  ;;  %s1354_s7 = int_to_ptr.vmem [resolvable:$false] %s1353_s7 }
  0x4e   : > { %v1222_v15 = vld [vmem:[%s1574_s23 + $0x58] sm:$0xff]   ;;  %v1224_v17 = vld [vmem:[%s1574_s23 + $0x60] sm:$0xff]   ;;  %v1226_v19 = vld [vmem:[%s1574_s23 + $0x68] sm:$0xff]   ;;  %s1355_s10 = scalar_lea.vmem %s1354_s7, 4096  ;;  %p1356_p10 = scmp.lt.s32.totalorder %s1661_s17, %s1354_s7 }
  0x4f   : > { %v1227_v20 = vld [vmem:[%s1574_s23 + $0x30] sm:$0xff]   ;;  %v1229_v22 = vld [vmem:[%s1574_s23 + $0x38] sm:$0xff]   ;;  %v1603_v24 = vld [vmem:[%s1709_s2] ss:$0 sm:$0xff]  ;;  %p1352_p9 = pneg %p1351_p7  ;;  %p1357_p12 = scmp.lt.s32.totalorder %s1355_s10, %s1349_s8 }
  0x50   : > { %v1228_v21 = vld [vmem:[%s1574_s23 + $0x70] sm:$0xff]   ;;  %v1230_v23 = vld [vmem:[%s1574_s23 + $0x78] sm:$0xff]  }
  0x51   : > { %p1358_p13 = por %p1357_p12, %p1356_p10 }
  0x52   : > { %1085 = vmatpush3.bf16.xpose.msra.mxu0 %v1208_v1  ;;  %1139 = vmatpush3.bf16.xpose.msra.mxu1 %v1208_v1 }
  0x53   : > { %1086 = vmatprep.subr.bf16.mxu0 %v1209_v2  ;;  %1132 = vmatprep.subr.bf16.mxu1 %v1209_v2  ;;  %p1359_p0 = pnand %p1358_p13, %p1352_p9 }
  0x5a   : > { %1087 = vmatpush3.bf16.xpose.msra.mxu0 %v1209_v2  ;;  %1140 = vmatpush3.bf16.xpose.msra.mxu1 %v1209_v2 }
  0x5b   : > { %1088 = vmatprep.subr.bf16.mxu0 %v1210_v5  ;;  %1133 = vmatprep.subr.bf16.mxu1 %v1210_v5 }
  0x62   : > { %1089 = vmatpush3.bf16.xpose.msra.mxu0 %v1210_v5  ;;  %1141 = vmatpush3.bf16.xpose.msra.mxu1 %v1210_v5 }
  0x63   : > { %1090 = vmatprep.subr.bf16.mxu0 %v1211_v6  ;;  %1134 = vmatprep.subr.bf16.mxu1 %v1211_v6 }
  0x6a   : > { %1091 = vmatpush3.bf16.xpose.msra.mxu0 %v1211_v6  ;;  %1142 = vmatpush3.bf16.xpose.msra.mxu1 %v1211_v6 }
  0x6b   : > { %1092 = vmatprep.subr.bf16.mxu0 %v1212_v7  ;;  %1135 = vmatprep.subr.bf16.mxu1 %v1212_v7 }
  0x72   : > { %1093 = vmatpush3.bf16.xpose.msra.mxu0 %v1212_v7  ;;  %1143 = vmatpush3.bf16.xpose.msra.mxu1 %v1212_v7 }
  0x73   : > { %1094 = vmatprep.subr.bf16.mxu0 %v1213_v8  ;;  %1136 = vmatprep.subr.bf16.mxu1 %v1213_v8 }
  0x7a   : > { %1095 = vmatpush3.bf16.xpose.msra.mxu0 %v1213_v8  ;;  %1144 = vmatpush3.bf16.xpose.msra.mxu1 %v1213_v8 }
  0x7b   : > { %1096 = vmatprep.subr.bf16.mxu0 %v1214_v9  ;;  %1137 = vmatprep.subr.bf16.mxu1 %v1214_v9 }
  0x82   : > { %1097 = vmatpush3.bf16.xpose.msra.mxu0 %v1214_v9  ;;  %1145 = vmatpush3.bf16.xpose.msra.mxu1 %v1214_v9 }
  0x89   : > { %1099 = vmatmul.mubr.bf16.vlgmr.msra.gmra.mxu0 %v1217_v10  ;;  %1115 = vmatmul.mubr.bf16.vlgmr.msra.gmra.mxu1 %v1218_v11 }
  0x8a   : > { %1102 = vmatprep.mubr.bf16.mxu0 %v1219_v12  ;;  %1118 = vmatprep.mubr.bf16.mxu1 %v1220_v13 }
  0x91   : > { %1103 = vmatmul.mubr.bf16.gmra.mxu0 %v1221_v14  ;;  %1119 = vmatmul.mubr.bf16.gmra.mxu1 %v1222_v15 }
  0x92   : > { %1106 = vmatprep.mubr.bf16.mxu0 %v1223_v16  ;;  %1122 = vmatprep.mubr.bf16.mxu1 %v1224_v17 }
  0x99   : > { %1107 = vmatmul.mubr.bf16.gmra.mxu0 %v1225_v18  ;;  %1123 = vmatmul.mubr.bf16.gmra.mxu1 %v1226_v19 }
  0x9a   : > { %1110 = vmatprep.mubr.bf16.mxu0 %v1227_v20  ;;  %1126 = vmatprep.mubr.bf16.mxu1 %v1228_v21 }
  0xa1   : > { %1111 = vmatmul.mubr.bf16.gmra.mxu0 %v1229_v22  ;;  %1127 = vmatmul.mubr.bf16.gmra.mxu1 %v1230_v23 }
 0x149   : > { %v1100_v25 = vpop.f32.mrf.mxu0  ;;  %v1116_v26 = vpop.f32.mrf.mxu1 }
 0x14a   : > { %v449_v27 = vadd.f32 %v1100_v25, %v1603_v24  ;;  %v513_v28 = vadd.f32 %v1116_v26, %v1603_v24 }
 0x14b   : > { %v440_v29 = vpop.f32.mrf.mxu0  ;;  %v504_v30 = vpop.f32.mrf.mxu1 }
 0x14c   : > { %1231 = vtanh.f32 %v449_v27  ;;  %v441_v31 = vadd.f32 %v1603_v24, %v440_v29  ;;  %v505_v32 = vadd.f32 %v1603_v24, %v504_v30 }
 0x14d   : > { %1233 = vtanh.f32 %v513_v28  ;;  %v1101_v33 = vpop.f32.mrf.mxu0  ;;  %v1117_v34 = vpop.f32.mrf.mxu1 }
 0x14e   : > { %1235 = vtanh.f32 %v441_v31  ;;  %v452_v35 = vadd.f32 %v1101_v33, %v1603_v24  ;;  %v516_v36 = vadd.f32 %v1117_v34, %v1603_v24 }
 0x14f   : > { %1237 = vtanh.f32 %v505_v32  ;;  %v443_v37 = vpop.f32.mrf.mxu0  ;;  %v507_v38 = vpop.f32.mrf.mxu1 }
 0x150   : > { %1239 = vtanh.f32 %v452_v35  ;;  %v444_v39 = vadd.f32 %v1603_v24, %v443_v37  ;;  %v508_v40 = vadd.f32 %v1603_v24, %v507_v38 }
 0x151   : > { %1241 = vtanh.f32 %v516_v36  ;;  %v1104_v41 = vpop.f32.mrf.mxu0  ;;  %v1120_v42 = vpop.f32.mrf.mxu1 }
 0x152   : > { %1243 = vtanh.f32 %v444_v39  ;;  %v465_v43 = vadd.f32 %v1104_v41, %v1603_v24  ;;  %v529_v44 = vadd.f32 %v1120_v42, %v1603_v24 }
 0x153   : > { %1245 = vtanh.f32 %v508_v40  ;;  %v456_v45 = vpop.f32.mrf.mxu0  ;;  %v520_v46 = vpop.f32.mrf.mxu1 }
 0x154   : > { %1247 = vtanh.f32 %v465_v43  ;;  %v457_v47 = vadd.f32 %v1603_v24, %v456_v45  ;;  %v521_v48 = vadd.f32 %v1603_v24, %v520_v46 }
 0x155   : > { %1249 = vtanh.f32 %v529_v44  ;;  %v1105_v49 = vpop.f32.mrf.mxu0  ;;  %v1121_v50 = vpop.f32.mrf.mxu1 }
 0x156   : > { %1251 = vtanh.f32 %v457_v47  ;;  %v468_v51 = vadd.f32 %v1105_v49, %v1603_v24  ;;  %v532_v52 = vadd.f32 %v1121_v50, %v1603_v24 }
 0x157   : > { %1253 = vtanh.f32 %v521_v48  ;;  %v459_v53 = vpop.f32.mrf.mxu0  ;;  %v523_v54 = vpop.f32.mrf.mxu1 }
 0x158   : > { %1255 = vtanh.f32 %v468_v51  ;;  %v460_v55 = vadd.f32 %v1603_v24, %v459_v53  ;;  %v524_v56 = vadd.f32 %v1603_v24, %v523_v54 }
 0x159   : > { %v1232_v57 = vpop.eup %1231  ;;  %1257 = vtanh.f32 %v532_v52  ;;  %v1108_v58 = vpop.f32.mrf.mxu0 }
 0x15a   : > { %v1124_v59 = vpop.f32.mrf.mxu1  ;;  %v1234_v60 = vpop.eup %1233  ;;  %1259 = vtanh.f32 %v460_v55  ;;  %v481_v61 = vadd.f32 %v1108_v58, %v1603_v24 }
 0x15b   : > { %v545_v62 = vadd.f32 %v1124_v59, %v1603_v24  ;;  %v1236_v63 = vpop.eup %1235  ;;  %1261 = vtanh.f32 %v524_v56  ;;  %v472_v0 = vpop.f32.mrf.mxu0 }
 0x15c   : > { %v536_v1 = vpop.f32.mrf.mxu1  ;;  %v1238_v2 = vpop.eup %1237  ;;  %1263 = vtanh.f32 %v481_v61  ;;  %v473_v3 = vadd.f32 %v1603_v24, %v472_v0 }
 0x15d   : > { %v537_v4 = vadd.f32 %v1603_v24, %v536_v1  ;;  %v1240_v5 = vpop.eup %1239  ;;  %1265 = vtanh.f32 %v545_v62  ;;  %v1109_v6 = vpop.f32.mrf.mxu0 }
 0x15e   : > { %v1125_v7 = vpop.f32.mrf.mxu1  ;;  %v1242_v8 = vpop.eup %1241  ;;  %v971_v9 = vpack.c.bf16 %v1240_v5, %v1232_v57  ;;  %1267 = vtanh.f32 %v473_v3  ;;  %v484_v10 = vadd.f32 %v1109_v6, %v1603_v24 }
 0x15f   : > { %v548_v11 = vadd.f32 %v1125_v7, %v1603_v24  ;;  %v1244_v12 = vpop.eup %1243  ;;  %v1011_v13 = vpack.c.bf16 %v1242_v8, %v1234_v60  ;;  %1269 = vtanh.f32 %v537_v4  ;;  %v475_v14 = vpop.f32.mrf.mxu0 }
 0x160   : > { %v539_v15 = vpop.f32.mrf.mxu1  ;;  %v1246_v16 = vpop.eup %1245  ;;  %1043 = vst [vmem:[%s1629_s28 + $0x8] sm:$0xff] %v971_v9   ;;  %v966_v17 = vpack.c.bf16 %v1244_v12, %v1236_v63  ;;  %1271 = vtanh.f32 %v484_v10  ;;  %v476_v18 = vadd.f32 %v1603_v24, %v475_v14 }
 0x161   : > { %v540_v19 = vadd.f32 %v1603_v24, %v539_v15  ;;  %v1248_v20 = vpop.eup %1247  ;;  %1051 = vst [vmem:[%s1629_s28 + $0x48] sm:$0xff] %v1011_v13   ;;  %v1006_v21 = vpack.c.bf16 %v1246_v16, %v1238_v2  ;;  %1273 = vtanh.f32 %v548_v11  ;;  %v1112_v22 = vpop.f32.mrf.mxu0 }
 0x162   : > { %v1128_v23 = vpop.f32.mrf.mxu1  ;;  %v1250_v25 = vpop.eup %1249  ;;  %967 = vst [vmem:[%s1629_s28] sm:$0xff] %v966_v17   ;;  %1275 = vtanh.f32 %v476_v18  ;;  %v497_v26 = vadd.f32 %v1112_v22, %v1603_v24 }
 0x163   : > { %v561_v27 = vadd.f32 %v1128_v23, %v1603_v24  ;;  %v1252_v28 = vpop.eup %1251  ;;  %1050 = vst [vmem:[%s1629_s28 + $0x40] sm:$0xff] %v1006_v21   ;;  %1277 = vtanh.f32 %v540_v19  ;;  %v488_v29 = vpop.f32.mrf.mxu0 }
 0x164   : > { %v552_v30 = vpop.f32.mrf.mxu1  ;;  %v1254_v31 = vpop.eup %1253  ;;  %1279 = vtanh.f32 %v497_v26  ;;  %v489_v32 = vadd.f32 %v1603_v24, %v488_v29 }
 0x165   : > { %v553_v33 = vadd.f32 %v1603_v24, %v552_v30  ;;  %v1256_v34 = vpop.eup %1255  ;;  %1281 = vtanh.f32 %v561_v27  ;;  %v1113_v35 = vpop.f32.mrf.mxu0 }
 0x166   : > { %v1129_v36 = vpop.f32.mrf.mxu1  ;;  %v1258_v37 = vpop.eup %1257  ;;  %v981_v38 = vpack.c.bf16 %v1256_v34, %v1248_v20  ;;  %1283 = vtanh.f32 %v489_v32  ;;  %v500_v39 = vadd.f32 %v1113_v35, %v1603_v24 }
 0x167   : > { %v564_v40 = vadd.f32 %v1129_v36, %v1603_v24  ;;  %v1260_v41 = vpop.eup %1259  ;;  %v1021_v42 = vpack.c.bf16 %v1258_v37, %v1250_v25  ;;  %1285 = vtanh.f32 %v553_v33  ;;  %v491_v43 = vpop.f32.mrf.mxu0 }
 0x168   : > { %v555_v44 = vpop.f32.mrf.mxu1  ;;  %v1262_v45 = vpop.eup %1261  ;;  %1045 = vst [vmem:[%s1629_s28 + $0x18] sm:$0xff] %v981_v38   ;;  %v976_v46 = vpack.c.bf16 %v1260_v41, %v1252_v28  ;;  %1287 = vtanh.f32 %v500_v39  ;;  %v492_v47 = vadd.f32 %v1603_v24, %v491_v43 }
 0x169   : > { %v556_v48 = vadd.f32 %v1603_v24, %v555_v44  ;;  %v1264_v49 = vpop.eup %1263  ;;  %1053 = vst [vmem:[%s1629_s28 + $0x58] sm:$0xff] %v1021_v42   ;;  %v1016_v50 = vpack.c.bf16 %v1262_v45, %v1254_v31  ;;  %1289 = vtanh.f32 %v564_v40 }
 0x16a   : > { %v1266_v51 = vpop.eup %1265  ;;  %1044 = vst [vmem:[%s1629_s28 + $0x10] sm:$0xff] %v976_v46   ;;  %1291 = vtanh.f32 %v492_v47 }
 0x16b   : > { %v1268_v52 = vpop.eup %1267  ;;  %1052 = vst [vmem:[%s1629_s28 + $0x50] sm:$0xff] %v1016_v50   ;;  %1293 = vtanh.f32 %v556_v48 }
 0x16c   : > { %v1270_v53 = vpop.eup %1269 }
 0x16d   : > { %v1272_v54 = vpop.eup %1271 }
 0x16e   : > { %v1274_v55 = vpop.eup %1273  ;;  %v991_v56 = vpack.c.bf16 %v1272_v54, %v1264_v49 }
 0x16f   : > { %v1276_v24 = vpop.eup %1275  ;;  %v1031_v57 = vpack.c.bf16 %v1274_v55, %v1266_v51 }
 0x170   : > { %v1278_v58 = vpop.eup %1277  ;;  %1047 = vst [vmem:[%s1629_s28 + $0x28] sm:$0xff] %v991_v56   ;;  %v986_v59 = vpack.c.bf16 %v1276_v24, %v1268_v52 }
 0x171   : > { %v1280_v60 = vpop.eup %1279  ;;  %1055 = vst [vmem:[%s1629_s28 + $0x68] sm:$0xff] %v1031_v57   ;;  %v1026_v61 = vpack.c.bf16 %v1278_v58, %v1270_v53 }
 0x172   : > { %v1282_v62 = vpop.eup %1281  ;;  %1046 = vst [vmem:[%s1629_s28 + $0x20] sm:$0xff] %v986_v59  }
 0x173   : > { %v1284_v63 = vpop.eup %1283  ;;  %1054 = vst [vmem:[%s1629_s28 + $0x60] sm:$0xff] %v1026_v61  }
 0x174   : > { %v1286_v0 = vpop.eup %1285 }
 0x175   : > { %v1288_v1 = vpop.eup %1287 }
 0x176   : > { %v1290_v2 = vpop.eup %1289  ;;  %v1001_v3 = vpack.c.bf16 %v1288_v1, %v1280_v60 }
 0x177   : > { %v1292_v4 = vpop.eup %1291  ;;  %v1041_v5 = vpack.c.bf16 %v1290_v2, %v1282_v62 }
 0x178   : > { %v1294_v6 = vpop.eup %1293  ;;  %1049 = vst [vmem:[%s1629_s28 + $0x38] sm:$0xff] %v1001_v3   ;;  %v996_v7 = vpack.c.bf16 %v1292_v4, %v1284_v63 }
 0x179   : > { %1057 = vst [vmem:[%s1629_s28 + $0x78] sm:$0xff] %v1041_v5   ;;  %v1036_v8 = vpack.c.bf16 %v1294_v6, %v1286_v0 }
 0x17a   : > { %1048 = vst [vmem:[%s1629_s28 + $0x30] sm:$0xff] %v996_v7  }
 0x17b   : > { %1056 = vst [vmem:[%s1629_s28 + $0x70] sm:$0xff] %v1036_v8  }
 0x17c   : > { %1362 = shalt.err (!%p1359_p0)
}
 0x17d   : > { %s1363_s11 = scalar_lea.hbm %s1659_s4, 2048  ;;  %s1367_s30 = scalar_lea.hbm %s1710_s3, 4096 }
 0x17e   : > { %p1364_p5 = scmp.ne.s32.totalorder %s1659_s4, %s1363_s11  ;;  %p1368_p4 = scmp.lt.s32.totalorder %s1659_s4, %s1710_s3 }
 0x17f   : > { %p1369_p6 = scmp.lt.s32.totalorder %s1367_s30, %s1363_s11 }
 0x180   : > { %p1365_p2 = pnand %p1364_p5, %p1726_p11 }
 0x181   : > { %p1370_p8 = por %p1369_p6, %p1368_p4 }
 0x182   : > { %p1366_p1 = pneg %p1365_p2 }
 0x184   : > { %p1371_p3 = pnand %p1370_p8, %p1366_p1 }
 0x186   : > { %1374 = shalt.err (!%p1371_p3)
}
 0x187   : > { %s1424_s20 = smov 64   ;;  %s1425_s28 = smov 4  }
 0x188   : > { %1152 = dma.vmem_to_hbm [thread:$0]  (%p1726_p11), %s1661_s17, 2048, %s1659_s4, %s760_s16, %s1424_s20, %s1424_s20, %s1425_s28  }
 0x189 PF: > { %s788_s29 = sand.u32 1, %s1405_s12   ;;  %p1727_p7 = scmp.ne.s32.totalorder %s1716_s19, 0 }
 0x18a   : > { %p1728_p9 = scmp.ge.s32.totalorder %s1417_s15, 2  ;;  %s789_s22 = scalar_lea.sflag [#allocation4], %s788_s29 }
 0x18c   : > { %p1163_p10 = pnand %p1728_p9, %p1727_p7 }
 0x18e   : > { %p1164_p12 = pneg %p1163_p10 }
 0x190   : > { %1400 = dma.done.wait (%p1164_p12), %s789_s22, 2048  }
 0x191   : > { %1402 = vsyncadd (%p1164_p12), %s789_s22, 4294965248  ;;  %p17_p13 = scmp.ge.s32.totalorder %s1500_s24, 4   ;;  %s1729_s12 = smov %s1409_s13 }
 0x192   : > { %s1730_s13 = smov %s1413_s14  ;;  %s1731_s14 = smov %s1520_s5 }
 0x193   : > { %s1732_s15 = smov %s1500_s24  ;;  %19 = sbr.rel (!%p17_p13) target bundleno = 6 (0x6), region = 81 }
 0x198   :  { %794 = vsyncpa [#allocation3], 1 }
 0x199   :  { %796 = vsyncpa [#allocation3 + $0x1], 1 }
 0x19a   :  { %797 = vsyncpa [#allocation6], 1 }
 0x19b   :  { %798 = vsyncpa [#allocation4], 1 }
 0x19c   :  { %800 = vsyncpa [#allocation4 + $0x1], 1 }

</bundles_post_ra>
